<compile_context>
chip_gen: v5e
topology: v5e:2x2
jax: 0.10.0
libtpu: 0.0.40
codegen_flags: <defaults>
</compile_context>

<pallas_src>
import jax
import jax.numpy as jnp
from jax.experimental import pallas as pl
from jax.experimental.pallas import tpu as pltpu

BN_EPS = 1e-5       # PyTorch BatchNorm3d default eps
NORM_EPS = 1e-12    # PyTorch F.normalize default eps


def video_aligner_kernel(x_ref,        # (NT, Ctot) bf16  pooled + channel-concat input
                         wb_ref,       # (Ctot, nH) bf16  block-diagonal branch conv weights
                         gb_ref,       # (1, nH)    f32   concatenated branch BN gamma
                         bb_ref,       # (1, nH)    f32   concatenated branch BN beta
                         we_ref,       # (nH, E)    bf16  embedding conv weight (pre-scaled by 1/6)
                         ge_ref,       # (1, E)     f32   embedding BN gamma
                         be_ref,       # (1, E)     f32   embedding BN beta
                         out_ref):     # (NT, E)    f32
    nt = x_ref.shape[0]
    inv_nt = 1.0 / nt

    # --- fused branch convs: one block-diagonal bf16 matmul, f32 accumulate --
    h = jnp.dot(x_ref[...], wb_ref[...], preferred_element_type=jnp.float32)

    # BatchNorm3d (training): one-pass batch stats + folded affine.
    s1 = jnp.sum(h, axis=0, keepdims=True)
    s2 = jnp.sum(h * h, axis=0, keepdims=True)
    mu = s1 * inv_nt
    var = jnp.maximum(s2 * inv_nt - mu * mu, 0.0)        # biased var, clamp fp noise
    scale = gb_ref[...] * jax.lax.rsqrt(var + BN_EPS)
    shift = bb_ref[...] - mu * scale
    hn = h * scale + shift

    # HSwish without the 1/6 (folded into the embedding weight in the wrapper).
    y = hn * jnp.clip(hn + 3.0, 0.0, 6.0)

    # --- embedding: 1x1x1 conv (bf16 MXU) -> BN(train) -> L2 normalize -------
    e = jnp.dot(y.astype(jnp.bfloat16), we_ref[...],
                preferred_element_type=jnp.float32)
    s1e = jnp.sum(e, axis=0, keepdims=True)
    s2e = jnp.sum(e * e, axis=0, keepdims=True)
    mu_e = s1e * inv_nt
    var_e = jnp.maximum(s2e * inv_nt - mu_e * mu_e, 0.0)
    scale_e = ge_ref[...] * jax.lax.rsqrt(var_e + BN_EPS)
    shift_e = be_ref[...] - mu_e * scale_e
    en = e * scale_e + shift_e

    # F.normalize(p=2): x / max(||x||, eps)  ==  x * rsqrt(max(||x||^2, eps^2))
    nsq = jnp.sum(en * en, axis=-1, keepdims=True)
    out_ref[...] = en * jax.lax.rsqrt(jnp.maximum(nsq, NORM_EPS * NORM_EPS))


def video_aligner_forward(inputs, params):
    """inputs: list of NCDHW arrays with equal temporal size.

    params: ([(w_i, gamma_i, beta_i) per stream], (we, ge, be))
      w_i:  (C_i, hidden)   gamma_i/beta_i: (1, hidden)
      we:   (n*hidden, E)   ge/be:          (1, E)
    """
    # TODO(synk): trilinear temporal Upsample (temporal_size < trg_temporal_size)
    #             is not implemented; all streams here share the target T.
    # TODO(synk): BN running_mean/running_var buffers are not updated (pure fwd).
    branch_params, (we, ge, be) = params
    N, T = inputs[0].shape[0], inputs[0].shape[2]
    E = we.shape[1]
    NT = N * T

    # Hoisted, mem-bound spatial average pool (XLA runs this near HBM roofline),
    # then channels-last flatten and concat across streams: (N*T, sum(C_i)).
    pooled = []
    for x in inputs:
        n, c, t, h, w = x.shape
        assert n == N and t == T
        p = jnp.mean(x, axis=(3, 4))                       # (N, C, T)
        pooled.append(jnp.transpose(p, (0, 2, 1)).reshape(NT, c))
    x_cat = jnp.concatenate(pooled, axis=-1).astype(jnp.bfloat16)   # (NT, Ctot)

    # Fuse the per-branch 1x1x1 convs into one block-diagonal weight and
    # concatenate the BN affine parameters (merge_mode='concat').
    # TODO(synk): once Ctot exceeds one MXU weight tile (128 on v5e / 256 on
    # v6e+), replace the zero-padded block-diagonal with per-stream dots that
    # write 128-aligned lane slices of an h scratch (saves wasted weight pushes).
    ws = [p[0] for p in branch_params]
    w_bd = jax.scipy.linalg.block_diag(*ws).astype(jnp.bfloat16)     # (Ctot, n*hidden)
    g_cat = jnp.concatenate([p[1] for p in branch_params], axis=-1)
    b_cat = jnp.concatenate([p[2] for p in branch_params], axis=-1)

    # Fold the HSwish 1/6 into the embedding weight (one-time param transform).
    we_k = (we * (1.0 / 6.0)).astype(jnp.bfloat16)                    # (n*hidden, E)

    nH = w_bd.shape[1]
    # Explicit VMEM budget: inputs/outputs + ~3 live f32 intermediates per stage.
    est_bytes = (x_cat.size * 2 + w_bd.size * 2 + we_k.size * 2
                 + NT * E * 4                       # output
                 + 3 * NT * nH * 4 + 3 * NT * E * 4 # h/hn/y and e/en/out temps
                 + 8 * (nH + E) * 4)                # per-channel rows
    vmem_limit = int(min(max(2 * est_bytes, 32 << 20), 120 << 20))

    out = pl.pallas_call(
        video_aligner_kernel,
        out_shape=jax.ShapeDtypeStruct((NT, E), jnp.float32),
        in_specs=[pl.BlockSpec(memory_space=pltpu.MemorySpace.VMEM)] * 7,
        out_specs=pl.BlockSpec(memory_space=pltpu.MemorySpace.VMEM),
        compiler_params=pltpu.CompilerParams(vmem_limit_bytes=vmem_limit),
    )(x_cat, w_bd, g_cat, b_cat, we_k, ge, be)

    # (N*T, E) -> (N, E, T, 1, 1)  (matches PyTorch NCDHW output of the embedding)
    return jnp.transpose(out.reshape(N, T, E), (0, 2, 1))[..., None, None]


# ---------------- pure-JAX f32 reference (for correctness check) ----------------
def _ref_forward(inputs, params):
    branch_params, (we, ge, be) = params

    def branch(x, w, g, b):
        pooled = jnp.mean(x, axis=(3, 4))                    # (N, C, T)
        pooled = jnp.transpose(pooled, (0, 2, 1))            # (N, T, C)
        h = pooled.reshape(-1, pooled.shape[-1]) @ w         # (N*T, hidden)
        mu = jnp.mean(h, axis=0, keepdims=True)
        var = jnp.mean((h - mu) ** 2, axis=0, keepdims=True)
        hn = (h - mu) / jnp.sqrt(var + BN_EPS) * g + b
        return hn * jnp.clip(hn + 3.0, 0.0, 6.0) / 6.0

    y = jnp.concatenate(
        [branch(x, w, g, b) for x, (w, g, b) in zip(inputs, branch_params)],
        axis=-1)
    e = y @ we
    mu = jnp.mean(e, axis=0, keepdims=True)
    var = jnp.mean((e - mu) ** 2, axis=0, keepdims=True)
    en = (e - mu) / jnp.sqrt(var + BN_EPS) * ge + be
    en = en / jnp.maximum(jnp.linalg.norm(en, axis=-1, keepdims=True), NORM_EPS)
    N, T = inputs[0].shape[0], inputs[0].shape[2]
    return jnp.transpose(en.reshape(N, T, -1), (0, 2, 1))[..., None, None]


if __name__ == "__main__":
    key = jax.random.PRNGKey(0)
    k = jax.random.split(key, 8)

    # module config (synthetic, small): in_channels=[4, 8], spatial=4x4,
    # temporal_size=[32, 32] (trg_T=32), hidden_size=64, embedding_size=128, concat.
    # hidden/embedding picked so 2*hidden = 128 and E = 128 (lane-dense), and
    # NT = N*T = 128 so the MXU M-dimension gets a full pass per matmul.
    N, T, H, W = 4, 32, 4, 4
    C0, C1, HID, EMB = 4, 8, 64, 128

    x0 = jax.random.normal(k[0], (N, C0, T, H, W), jnp.float32)
    x1 = jax.random.normal(k[1], (N, C1, T, H, W), jnp.float32)

    # Deterministic parameter init (kaiming-ish conv weights, BN gamma=1, beta=0).
    # conv_1x1x1_bn uses Conv3d(..., bias=False) followed by BatchNorm3d.
    w0 = jax.random.normal(k[2], (C0, HID), jnp.float32) * (2.0 / C0) ** 0.5
    w1 = jax.random.normal(k[3], (C1, HID), jnp.float32) * (2.0 / C1) ** 0.5
    we = jax.random.normal(k[4], (2 * HID, EMB), jnp.float32) * (2.0 / (2 * HID)) ** 0.5
    g0, b0 = jnp.ones((1, HID), jnp.float32), jnp.zeros((1, HID), jnp.float32)
    g1, b1 = jnp.ones((1, HID), jnp.float32), jnp.zeros((1, HID), jnp.float32)
    ge, be = jnp.ones((1, EMB), jnp.float32), jnp.zeros((1, EMB), jnp.float32)

    params = ([(w0, g0, b0), (w1, g1, b1)], (we, ge, be))

    out = video_aligner_forward([x0, x1], params)
    out = jax.block_until_ready(out)

    ref = _ref_forward([x0, x1], params)
    assert out.shape == (N, EMB, T, 1, 1), out.shape
    # Tolerance accounts for bf16 MXU operands (f32 accumulation, f32 BN stats).
    assert jnp.allclose(out, ref, rtol=1e-2, atol=5e-3), "mismatch vs reference"

    print("KERNEL_OK")
</pallas_src>

<mosaic_0001>
module attributes {stable_mosaic.version = 11 : i64} {
  func.func @video_aligner_kernel(%arg0: memref<128x12xbf16, #tpu.memory_space<vmem>>, %arg1: memref<12x128xbf16, #tpu.memory_space<vmem>>, %arg2: memref<1x128xf32, #tpu.memory_space<vmem>>, %arg3: memref<1x128xf32, #tpu.memory_space<vmem>>, %arg4: memref<128x128xbf16, #tpu.memory_space<vmem>>, %arg5: memref<1x128xf32, #tpu.memory_space<vmem>>, %arg6: memref<1x128xf32, #tpu.memory_space<vmem>>, %arg7: memref<128x128xf32, #tpu.memory_space<vmem>>) attributes {dimension_semantics = [], scalar_prefetch = 0 : i64, scratch_operands = 0 : i64, tpu.core_type = #tpu.core_type<tc>} {
    %c0 = arith.constant 0 : index
    %c0_0 = arith.constant 0 : index
    %0 = vector.load %arg0[%c0, %c0_0] : memref<128x12xbf16, #tpu.memory_space<vmem>>, vector<128x12xbf16>
    %c0_1 = arith.constant 0 : index
    %c0_2 = arith.constant 0 : index
    %1 = vector.load %arg1[%c0_1, %c0_2] : memref<12x128xbf16, #tpu.memory_space<vmem>>, vector<12x128xbf16>
    %cst = arith.constant dense<0.000000e+00> : vector<128x128xf32>
    %2 = tpu.matmul %0, %1, %cst {dimension_numbers = #tpu.dot_dimension_numbers<[1], [0], [0], [1], [0, 0, 1, 1], [], []>} : vector<128x12xbf16>, vector<12x128xbf16>, vector<128x128xf32> -> vector<128x128xf32>
    %cst_3 = arith.constant dense<0.000000e+00> : vector<128xf32>
    %3 = vector.multi_reduction <add>, %2, %cst_3 [0] : vector<128x128xf32> to vector<128xf32>
    %4 = vector.shape_cast %3 : vector<128xf32> to vector<1x128xf32>
    %5 = arith.mulf %2, %2 : vector<128x128xf32>
    %cst_4 = arith.constant dense<0.000000e+00> : vector<128xf32>
    %6 = vector.multi_reduction <add>, %5, %cst_4 [0] : vector<128x128xf32> to vector<128xf32>
    %7 = vector.shape_cast %6 : vector<128xf32> to vector<1x128xf32>
    %cst_5 = arith.constant 7.812500e-03 : f32
    %8 = vector.broadcast %cst_5 : f32 to vector<1x128xf32>
    %9 = arith.mulf %4, %8 : vector<1x128xf32>
    %cst_6 = arith.constant 7.812500e-03 : f32
    %10 = vector.broadcast %cst_6 : f32 to vector<1x128xf32>
    %11 = arith.mulf %7, %10 : vector<1x128xf32>
    %12 = arith.mulf %9, %9 : vector<1x128xf32>
    %13 = arith.subf %11, %12 : vector<1x128xf32>
    %cst_7 = arith.constant 0.000000e+00 : f32
    %14 = vector.broadcast %cst_7 : f32 to vector<1x128xf32>
    %15 = arith.maximumf %13, %14 : vector<1x128xf32>
    %c0_8 = arith.constant 0 : index
    %c0_9 = arith.constant 0 : index
    %16 = vector.load %arg2[%c0_8, %c0_9] : memref<1x128xf32, #tpu.memory_space<vmem>>, vector<1x128xf32>
    %cst_10 = arith.constant 9.99999974E-6 : f32
    %17 = vector.broadcast %cst_10 : f32 to vector<1x128xf32>
    %18 = arith.addf %15, %17 : vector<1x128xf32>
    %19 = math.rsqrt %18 : vector<1x128xf32>
    %20 = arith.mulf %16, %19 : vector<1x128xf32>
    %c0_11 = arith.constant 0 : index
    %c0_12 = arith.constant 0 : index
    %21 = vector.load %arg3[%c0_11, %c0_12] : memref<1x128xf32, #tpu.memory_space<vmem>>, vector<1x128xf32>
    %22 = arith.mulf %9, %20 : vector<1x128xf32>
    %23 = arith.subf %21, %22 : vector<1x128xf32>
    %24 = vector.broadcast %20 : vector<1x128xf32> to vector<128x128xf32>
    %25 = arith.mulf %2, %24 : vector<128x128xf32>
    %26 = vector.broadcast %23 : vector<1x128xf32> to vector<128x128xf32>
    %27 = arith.addf %25, %26 : vector<128x128xf32>
    %cst_13 = arith.constant 3.000000e+00 : f32
    %28 = vector.broadcast %cst_13 : f32 to vector<128x128xf32>
    %29 = arith.addf %27, %28 : vector<128x128xf32>
    %cst_14 = arith.constant 0.000000e+00 : f32
    %cst_15 = arith.constant 6.000000e+00 : f32
    %30 = vector.broadcast %cst_14 : f32 to vector<128x128xf32>
    %31 = arith.maximumf %30, %29 : vector<128x128xf32>
    %32 = vector.broadcast %cst_15 : f32 to vector<128x128xf32>
    %33 = arith.minimumf %32, %31 : vector<128x128xf32>
    %34 = arith.mulf %27, %33 : vector<128x128xf32>
    %35 = arith.truncf %34 : vector<128x128xf32> to vector<128x128xbf16>
    %c0_16 = arith.constant 0 : index
    %c0_17 = arith.constant 0 : index
    %36 = vector.load %arg4[%c0_16, %c0_17] : memref<128x128xbf16, #tpu.memory_space<vmem>>, vector<128x128xbf16>
    %cst_18 = arith.constant dense<0.000000e+00> : vector<128x128xf32>
    %37 = tpu.matmul %35, %36, %cst_18 {dimension_numbers = #tpu.dot_dimension_numbers<[1], [0], [0], [1], [0, 0, 1, 1], [], []>} : vector<128x128xbf16>, vector<128x128xbf16>, vector<128x128xf32> -> vector<128x128xf32>
    %cst_19 = arith.constant dense<0.000000e+00> : vector<128xf32>
    %38 = vector.multi_reduction <add>, %37, %cst_19 [0] : vector<128x128xf32> to vector<128xf32>
    %39 = vector.shape_cast %38 : vector<128xf32> to vector<1x128xf32>
    %40 = arith.mulf %37, %37 : vector<128x128xf32>
    %cst_20 = arith.constant dense<0.000000e+00> : vector<128xf32>
    %41 = vector.multi_reduction <add>, %40, %cst_20 [0] : vector<128x128xf32> to vector<128xf32>
    %42 = vector.shape_cast %41 : vector<128xf32> to vector<1x128xf32>
    %cst_21 = arith.constant 7.812500e-03 : f32
    %43 = vector.broadcast %cst_21 : f32 to vector<1x128xf32>
    %44 = arith.mulf %39, %43 : vector<1x128xf32>
    %cst_22 = arith.constant 7.812500e-03 : f32
    %45 = vector.broadcast %cst_22 : f32 to vector<1x128xf32>
    %46 = arith.mulf %42, %45 : vector<1x128xf32>
    %47 = arith.mulf %44, %44 : vector<1x128xf32>
    %48 = arith.subf %46, %47 : vector<1x128xf32>
    %cst_23 = arith.constant 0.000000e+00 : f32
    %49 = vector.broadcast %cst_23 : f32 to vector<1x128xf32>
    %50 = arith.maximumf %48, %49 : vector<1x128xf32>
    %c0_24 = arith.constant 0 : index
    %c0_25 = arith.constant 0 : index
    %51 = vector.load %arg5[%c0_24, %c0_25] : memref<1x128xf32, #tpu.memory_space<vmem>>, vector<1x128xf32>
    %cst_26 = arith.constant 9.99999974E-6 : f32
    %52 = vector.broadcast %cst_26 : f32 to vector<1x128xf32>
    %53 = arith.addf %50, %52 : vector<1x128xf32>
    %54 = math.rsqrt %53 : vector<1x128xf32>
    %55 = arith.mulf %51, %54 : vector<1x128xf32>
    %c0_27 = arith.constant 0 : index
    %c0_28 = arith.constant 0 : index
    %56 = vector.load %arg6[%c0_27, %c0_28] : memref<1x128xf32, #tpu.memory_space<vmem>>, vector<1x128xf32>
    %57 = arith.mulf %44, %55 : vector<1x128xf32>
    %58 = arith.subf %56, %57 : vector<1x128xf32>
    %59 = vector.broadcast %55 : vector<1x128xf32> to vector<128x128xf32>
    %60 = arith.mulf %37, %59 : vector<128x128xf32>
    %61 = vector.broadcast %58 : vector<1x128xf32> to vector<128x128xf32>
    %62 = arith.addf %60, %61 : vector<128x128xf32>
    %63 = arith.mulf %62, %62 : vector<128x128xf32>
    %cst_29 = arith.constant dense<0.000000e+00> : vector<128xf32>
    %64 = vector.multi_reduction <add>, %63, %cst_29 [1] : vector<128x128xf32> to vector<128xf32>
    %65 = vector.shape_cast %64 : vector<128xf32> to vector<128x1xf32>
    %cst_30 = arith.constant 1.000000e-24 : f32
    %66 = vector.broadcast %cst_30 : f32 to vector<128x1xf32>
    %67 = arith.maximumf %65, %66 : vector<128x1xf32>
    %68 = math.rsqrt %67 : vector<128x1xf32>
    %69 = vector.broadcast %68 : vector<128x1xf32> to vector<128x128xf32>
    %70 = arith.mulf %62, %69 : vector<128x128xf32>
    %c0_31 = arith.constant 0 : index
    %c0_32 = arith.constant 0 : index
    %71 = vector.load %arg7[%c0_31, %c0_32] : memref<128x128xf32, #tpu.memory_space<vmem>>, vector<128x128xf32>
    tpu.vector_store %arg7[%c0_31, %c0_32], %70 {strides = array<i32>} : memref<128x128xf32, #tpu.memory_space<vmem>>, vector<128x128xf32>,
    return
  }
}

</mosaic_0001>

<bundles_post_ra>
// kernel: tpu_custom_call.1
= control target key start
LH: loop header
LB: loop body
LE: loop exit
PB: predicated region body
PF: predicated region fallthrough
CT: control target
= control target key end

     0   :  { %vm116_vm0 = vcmask 1045504   ;;  %s1555_s0 = inlined_call_operand.vmem [shape: bf16[128,12], index: 0, kind: input, shape index: {}]   ;;  %s1556_s1 = inlined_call_operand.vmem [shape: bf16[12,128], index: 1, kind: input, shape index: {}]   ;;  %s1557_s2 = inlined_call_operand.vmem [shape: f32[1,128], index: 2, kind: input, shape index: {}]   ;;  %s1558_s3 = inlined_call_operand.vmem [shape: f32[1,128], index: 3, kind: input, shape index: {}]   ;;  %s1559_s4 = inlined_call_operand.vmem [shape: bf16[128,128], index: 4, kind: input, shape index: {}]   ;;  %s1560_s5 = inlined_call_operand.vmem [shape: f32[1,128], index: 5, kind: input, shape index: {}]   ;;  %s1561_s6 = inlined_call_operand.vmem [shape: f32[1,128], index: 6, kind: input, shape index: {}]   ;;  %s1562_s7 = inlined_call_operand.hbm [shape: f32[128,128], index: 7, kind: output, shape index: {}]  }
   0x1   :  { %v896_v0 = vld [vmem:[%s1556_s1] sm:$0xf]  ;;  %v946_v1 = vld [vmem:[%s1556_s1] sm:$0x30] }
   0x2   :  { %v897_v2 = vor.u32 %v946_v1, %v896_v0 }
   0x3   :  { %12 = vsyncpa [#allocation3], 0  ;;  %v938_v4 = vld [vmem:[%s1555_s0] sm:$0xff]  ;;  %v943_v5 = vld [vmem:[%s1555_s0 + $0x28] sm:$0xff]  ;;  %vm91_vm1 = vcmask 97280   ;;  %s850_s18 = sshll.u32 %s1562_s7, 4  ;;  %s851_s18 = int_to_ptr.hbm [resolvable:$true] %s850_s18 }
   0x4   :  { %v118_v3 = vsel %vm116_vm0, %v897_v2, 0  ;;  %v939_v6 = vld [vmem:[%s1555_s0 + $0x8] sm:$0xff]  ;;  %v944_v7 = vld [vmem:[%s1555_s0 + $0x30] sm:$0xff]  ;;  %v945_v9 = vld [vmem:[%s1555_s0 + $0x38] sm:$0xff]  ;;  %s1030_s19 = smov 128  }
   0x5   :  { %127 = vmatpush.bf16.msra.mxu0 %v118_v3  ;;  %955 = vmatpush.bf16.msra.mxu3 %v118_v3  ;;  %v940_v8 = vld [vmem:[%s1555_s0 + $0x10] sm:$0xff]  ;;  %v941_v10 = vld [vmem:[%s1555_s0 + $0x18] sm:$0xff]  ;;  %v942_v11 = vld [vmem:[%s1555_s0 + $0x20] sm:$0xff]  ;;  %s1031_s0 = smov 8  }
   0x6   :  { %v954_v3 = vld [vmem:[%s1559_s4 + $0x38] sm:$0xff] }
   0x7   :  { %422 = vmatpush.bf16.msra.mxu1 %v954_v3  ;;  %956 = vmatpush.bf16.msra.mxu2 %v954_v3 }
   0x8   :  { %898 = vmatmul.msk.bf16.vlgmr.msra.gmra.mxu0 %vm91_vm1, %v938_v4  ;;  %903 = vmatmul.msk.bf16.vlgmr.msra.gmra.mxu3 %vm91_vm1, %v943_v5 }
  0x18   :  { %899 = vmatmul.msk.bf16.gmra.mxu0 %vm91_vm1, %v939_v6  ;;  %904 = vmatmul.msk.bf16.gmra.mxu3 %vm91_vm1, %v944_v7 }
  0x28   :  { %900 = vmatmul.msk.bf16.gmra.mxu0 %vm91_vm1, %v940_v8  ;;  %905 = vmatmul.msk.bf16.gmra.mxu3 %vm91_vm1, %v945_v9 }
  0x38   :  { %901 = vmatmul.msk.bf16.gmra.mxu0 %vm91_vm1, %v941_v10  ;;  %v953_v10 = vld [vmem:[%s1559_s4 + $0x30] sm:$0xff] }
  0x39   :  { %423 = vmatpush.bf16.msra.mxu1 %v953_v10  ;;  %957 = vmatpush.bf16.msra.mxu2 %v953_v10 }
  0x48   :  { %902 = vmatmul.msk.bf16.gmra.mxu0 %vm91_vm1, %v942_v11 }
  0x85   :  { %v1102_v12 = vpop.f32.mrf.mxu0 }
  0x86   :  { %v190_v24 = vmul.f32 %v1102_v12, %v1102_v12 }
  0x8b   :  { %v1112_v17 = vpop.f32.mrf.mxu3 }
  0x8c   :  { %v200_v54 = vmul.f32 %v1112_v17, %v1112_v17 }
  0x8d   :  { %v1104_v13 = vpop.f32.mrf.mxu0 }
  0x8e   :  { %v191_v22 = vmul.f32 %v1104_v13, %v1104_v13  ;;  %v169_v25 = vadd.f32 %v1104_v13, %v1102_v12 }
  0x90   :  { %v206_v27 = vadd.f32 %v191_v22, %v190_v24 }
  0x93   :  { %v1116_v19 = vpop.f32.mrf.mxu3 }
  0x94   :  { %v201_v57 = vmul.f32 %v1116_v19, %v1116_v19 }
  0x95   :  { %v1106_v14 = vpop.f32.mrf.mxu0 }
  0x96   :  { %v192_v26 = vmul.f32 %v1106_v14, %v1106_v14  ;;  %v170_v28 = vadd.f32 %v169_v25, %v1106_v14 }
  0x98   :  { %v207_v30 = vadd.f32 %v206_v27, %v192_v26  ;;  %v952_v26 = vld [vmem:[%s1559_s4 + $0x28] sm:$0xff] }
  0x99   :  { %424 = vmatpush.bf16.msra.mxu1 %v952_v26  ;;  %958 = vmatpush.bf16.msra.mxu2 %v952_v26 }
  0x9b   :  { %v1120_v21 = vpop.f32.mrf.mxu3 }
  0x9c   :  { %v202_v60 = vmul.f32 %v1120_v21, %v1120_v21 }
  0x9d   :  { %v1108_v15 = vpop.f32.mrf.mxu0 }
  0x9e   :  { %v193_v29 = vmul.f32 %v1108_v15, %v1108_v15  ;;  %v171_v31 = vadd.f32 %v170_v28, %v1108_v15 }
  0xa0   :  { %v208_v34 = vadd.f32 %v207_v30, %v193_v29 }
  0xa3   :  { %v1138_v33 = vpop.f32.mrf.mxu3 }
  0xa4   :  { %v203_v63 = vmul.f32 %v1138_v33, %v1138_v33 }
  0xa5   :  { %v1110_v16 = vpop.f32.mrf.mxu0 }
  0xa6   :  { %v194_v32 = vmul.f32 %v1110_v16, %v1110_v16  ;;  %v172_v35 = vadd.f32 %v171_v31, %v1110_v16  ;;  %v951_v31 = vld [vmem:[%s1559_s4 + $0x20] sm:$0xff] }
  0xa7   :  { %425 = vmatpush.bf16.msra.mxu1 %v951_v31  ;;  %959 = vmatpush.bf16.msra.mxu2 %v951_v31 }
  0xa8   :  { %v209_v38 = vadd.f32 %v208_v34, %v194_v32 }
  0xab   :  { %v1155_v49 = vpop.f32.mrf.mxu3 }
  0xac   :  { %v204_v4 = vmul.f32 %v1155_v49, %v1155_v49 }
  0xad   :  { %v1114_v18 = vpop.f32.mrf.mxu0 }
  0xae   :  { %v195_v36 = vmul.f32 %v1114_v18, %v1114_v18  ;;  %v173_v39 = vadd.f32 %v172_v35, %v1114_v18 }
  0xb0   :  { %v210_v41 = vadd.f32 %v209_v38, %v195_v36  ;;  %v950_v38 = vld [vmem:[%s1559_s4 + $0x18] sm:$0xff] }
  0xb1   :  { %426 = vmatpush.bf16.msra.mxu1 %v950_v38  ;;  %960 = vmatpush.bf16.msra.mxu2 %v950_v38 }
  0xb3   :  { %v1174_v2 = vpop.f32.mrf.mxu3 }
  0xb4   :  { %v205_v8 = vmul.f32 %v1174_v2, %v1174_v2 }
  0xb5   :  { %v1118_v20 = vpop.f32.mrf.mxu0 }
  0xb6   :  { %v196_v40 = vmul.f32 %v1118_v20, %v1118_v20  ;;  %v174_v42 = vadd.f32 %v173_v39, %v1118_v20 }
  0xb8   :  { %v211_v44 = vadd.f32 %v210_v41, %v196_v40 }
  0xbd   :  { %v1124_v23 = vpop.f32.mrf.mxu0 }
  0xbe   :  { %v197_v43 = vmul.f32 %v1124_v23, %v1124_v23  ;;  %v175_v45 = vadd.f32 %v174_v42, %v1124_v23 }
  0xc0   :  { %v212_v47 = vadd.f32 %v211_v44, %v197_v43  ;;  %v949_v43 = vld [vmem:[%s1559_s4 + $0x10] sm:$0xff] }
  0xc1   :  { %427 = vmatpush.bf16.msra.mxu1 %v949_v43  ;;  %961 = vmatpush.bf16.msra.mxu2 %v949_v43 }
  0xc5   :  { %v1143_v37 = vpop.f32.mrf.mxu0 }
  0xc6   :  { %v198_v46 = vmul.f32 %v1143_v37, %v1143_v37  ;;  %v176_v48 = vadd.f32 %v175_v45, %v1143_v37 }
  0xc8   :  { %v213_v51 = vadd.f32 %v212_v47, %v198_v46  ;;  %v948_v46 = vld [vmem:[%s1559_s4 + $0x8] sm:$0xff] }
  0xc9   :  { %428 = vmatpush.bf16.msra.mxu1 %v948_v46  ;;  %962 = vmatpush.bf16.msra.mxu2 %v948_v46 }
  0xcd   :  { %v1157_v50 = vpop.f32.mrf.mxu0 }
  0xce   :  { %v177_v52 = vadd.f32 %v176_v48, %v1157_v50  ;;  %v199_v53 = vmul.f32 %v1157_v50, %v1157_v50  ;;  %v947_v48 = vld [vmem:[%s1559_s4] sm:$0xff] }
  0xcf   :  { %429 = vmatpush.bf16.msra.mxu1 %v947_v48  ;;  %963 = vmatpush.bf16.msra.mxu2 %v947_v48 }
  0xd0   :  { %v178_v55 = vadd.f32 %v177_v52, %v1112_v17  ;;  %v214_v56 = vadd.f32 %v213_v51, %v199_v53 }
  0xd2   :  { %v179_v58 = vadd.f32 %v178_v55, %v1116_v19  ;;  %v215_v59 = vadd.f32 %v214_v56, %v200_v54  ;;  %v232_v56 = vld [vmem:[%s1557_s2] sm:$0x1] }
  0xd4   :  { %v216_v61 = vadd.f32 %v215_v59, %v201_v57  ;;  %v180_v62 = vadd.f32 %v179_v58, %v1120_v21 }
  0xd6   :  { %v181_v0 = vadd.f32 %v180_v62, %v1138_v33  ;;  %v217_v1 = vadd.f32 %v216_v61, %v202_v60  ;;  %v245_v60 = vld [vmem:[%s1558_s3] sm:$0x1] }
  0xd8   :  { %v182_v5 = vadd.f32 %v181_v0, %v1155_v49  ;;  %v218_v6 = vadd.f32 %v217_v1, %v203_v63 }
  0xda   :  { %v183_v7 = vadd.f32 %v182_v5, %v1174_v2  ;;  %v219_v9 = vadd.f32 %v218_v6, %v204_v4 }
  0xdc   :  { %v184_v11 = vrot.slane %v183_v7, 4  ;;  %v220_v22 = vadd.f32 %v219_v9, %v205_v8 }
  0xde   :  { %v185_v24 = vadd.f32 %v184_v11, %v183_v7  ;;  %v221_v25 = vrot.slane %v220_v22, 4 }
  0xe0   :  { %v186_v27 = vrot.slane %v185_v24, 2  ;;  %v222_v28 = vadd.f32 %v221_v25, %v220_v22 }
  0xe2   :  { %v187_v29 = vadd.f32 %v186_v27, %v185_v24  ;;  %v223_v30 = vrot.slane %v222_v28, 2 }
  0xe4   :  { %v188_v32 = vrot.slane %v187_v29, 1  ;;  %v224_v34 = vadd.f32 %v223_v30, %v222_v28 }
  0xe6   :  { %v189_v35 = vadd.f32 %v188_v32, %v187_v29  ;;  %v225_v36 = vrot.slane %v224_v34, 1 }
  0xe8   :  { %v226_v39 = vadd.f32 %v225_v36, %v224_v34  ;;  %v227_v40 = vmul.f32 0.0078125, %v189_v35 }
  0xea   :  { %v228_v41 = vmul.f32 0.0078125, %v226_v39  ;;  %v229_v42 = vmul.f32 %v227_v40, %v227_v40 }
  0xec   :  { %v230_v44 = vsub.f32 %v228_v41, %v229_v42 }
  0xee   :  { %v231_v45 = vmax.f32 %v230_v44, 0.0 }
  0xf0   :  { %v233_v47 = vadd.f32 1e-05, %v231_v45 }
  0xf2   :  { %967 = vrsqrt.f32 %v233_v47  ;;  %vm240_vm3 = vweird.f32 %v233_v47 }
  0xf8   :  { %v968_v51 = vpop.eup %967 }
  0xf9   :  { %v235_v52 = vmul.f32 %v968_v51, %v233_v47  ;;  %vm241_vm2 = vweird.f32 %v968_v51 }
  0xfa   :  { %vm242_vm4 = vmor %vm240_vm3, %vm241_vm2 }
  0xfb   :  { %v236_v53 = vmul.f32 %v968_v51, %v235_v52 }
  0xfd   :  { %v237_v54 = vmul.f32 0.5, %v236_v53 }
  0xff   :  { %v238_v55 = vsub.f32 1.5, %v237_v54 }
 0x101   :  { %v239_v57 = vmul.f32 %v968_v51, %v238_v55 }
 0x103   :  { %v243_v58 = vsel %vm242_vm4, %v968_v51, %v239_v57 }
 0x104   :  { %v244_v59 = vmul.f32 %v243_v58, %v232_v56 }
 0x106   :  { %v246_v61 = vmul.f32 %v244_v59, %v227_v40  ;;  %v1212_v62 = vperm.slane %v244_v59, 0 }
 0x108   :  { %v247_v63 = vsub.f32 %v245_v60, %v246_v61  ;;  %v251_v1 = vmul.f32 %v1212_v62, %v1102_v12  ;;  %v252_v3 = vmul.f32 %v1212_v62, %v1104_v13  ;;  %v259_v4 = vmul.f32 %v1212_v62, %v1143_v37 }
 0x109   :  { %v260_v5 = vmul.f32 %v1212_v62, %v1157_v50  ;;  %v253_v13 = vmul.f32 %v1212_v62, %v1106_v14  ;;  %v254_v50 = vmul.f32 %v1212_v62, %v1108_v15  ;;  %v261_v28 = vmul.f32 %v1212_v62, %v1112_v17 }
 0x10a   :  { %v1214_v0 = vperm.slane %v247_v63, 0  ;;  %v262_v29 = vmul.f32 %v1212_v62, %v1116_v19  ;;  %v255_v55 = vmul.f32 %v1212_v62, %v1110_v16  ;;  %v256_v56 = vmul.f32 %v1212_v62, %v1114_v18 }
 0x10b   :  { %v263_v57 = vmul.f32 %v1212_v62, %v1120_v21  ;;  %v264_v58 = vmul.f32 %v1212_v62, %v1138_v33 }
 0x10c   :  { %v270_v6 = vadd.f32 %v1214_v0, %v251_v1  ;;  %v271_v7 = vadd.f32 %v1214_v0, %v252_v3  ;;  %v278_v8 = vadd.f32 %v1214_v0, %v259_v4  ;;  %v279_v9 = vadd.f32 %v1214_v0, %v260_v5 }
 0x10d   :  { %v272_v27 = vadd.f32 %v1214_v0, %v253_v13  ;;  %v273_v14 = vadd.f32 %v1214_v0, %v254_v50  ;;  %v280_v35 = vadd.f32 %v1214_v0, %v261_v28  ;;  %v281_v36 = vadd.f32 %v1214_v0, %v262_v29 }
 0x10e   :  { %v286_v10 = vadd.f32 3.0, %v270_v6  ;;  %v287_v11 = vadd.f32 3.0, %v271_v7  ;;  %v294_v12 = vadd.f32 3.0, %v278_v8  ;;  %v295_v22 = vadd.f32 3.0, %v279_v9 }
 0x10f   :  { %v288_v42 = vadd.f32 3.0, %v272_v27  ;;  %v289_v17 = vadd.f32 3.0, %v273_v14  ;;  %v296_v44 = vadd.f32 3.0, %v280_v35  ;;  %v297_v19 = vadd.f32 3.0, %v281_v36 }
 0x110   :  { %v302_v24 = vmax.f32 %v286_v10, 0.0  ;;  %v303_v37 = vmax.f32 %v287_v11, 0.0  ;;  %v310_v25 = vmax.f32 %v294_v12, 0.0  ;;  %v311_v26 = vmax.f32 %v295_v22, 0.0 }
 0x111   :  { %v304_v45 = vmax.f32 %v288_v42, 0.0  ;;  %v305_v46 = vmax.f32 %v289_v17, 0.0  ;;  %v312_v47 = vmax.f32 %v296_v44, 0.0  ;;  %v313_v48 = vmax.f32 %v297_v19, 0.0 }
 0x112   :  { %v318_v30 = vmin.f32 %v302_v24, 6.0  ;;  %v319_v31 = vmin.f32 %v303_v37, 6.0  ;;  %v326_v32 = vmin.f32 %v310_v25, 6.0  ;;  %v327_v34 = vmin.f32 %v311_v26, 6.0 }
 0x113   :  { %v320_v51 = vmin.f32 %v304_v45, 6.0  ;;  %v321_v52 = vmin.f32 %v305_v46, 6.0  ;;  %v328_v53 = vmin.f32 %v312_v47, 6.0  ;;  %v329_v54 = vmin.f32 %v313_v48, 6.0 }
 0x114   :  { %v334_v15 = vmul.f32 %v318_v30, %v270_v6  ;;  %v335_v38 = vmul.f32 %v319_v31, %v271_v7  ;;  %v342_v39 = vmul.f32 %v326_v32, %v278_v8  ;;  %v343_v40 = vmul.f32 %v327_v34, %v279_v9 }
 0x115   :  { %v336_v59 = vmul.f32 %v320_v51, %v272_v27  ;;  %v337_v60 = vmul.f32 %v321_v52, %v273_v14  ;;  %v274_v61 = vadd.f32 %v1214_v0, %v255_v55  ;;  %v275_v63 = vadd.f32 %v1214_v0, %v256_v56 }
 0x116   :  { %v350_v41 = vpack.c.bf16 %v335_v38, %v334_v15  ;;  %v354_v43 = vpack.c.bf16 %v343_v40, %v342_v39  ;;  %v344_v1 = vmul.f32 %v328_v53, %v280_v35  ;;  %v345_v3 = vmul.f32 %v329_v54, %v281_v36 }
 0x117   :  { %v282_v4 = vadd.f32 %v1214_v0, %v263_v57  ;;  %v283_v16 = vadd.f32 %v1214_v0, %v264_v58  ;;  %v351_v5 = vpack.c.bf16 %v337_v60, %v336_v59  ;;  %v290_v18 = vadd.f32 3.0, %v274_v61 }
 0x118   :  { %430 = vmatmul.bf16.vlgmr.msra.gmra.mxu1 %v350_v41  ;;  %450 = vmatmul.bf16.vlgmr.msra.gmra.mxu2 %v354_v43  ;;  %v291_v6 = vadd.f32 3.0, %v275_v63  ;;  %v355_v7 = vpack.c.bf16 %v345_v3, %v344_v1  ;;  %v257_v37 = vmul.f32 %v1212_v62, %v1118_v20  ;;  %v258_v25 = vmul.f32 %v1212_v62, %v1124_v23 }
 0x119   :  { %v298_v21 = vadd.f32 3.0, %v282_v4  ;;  %v299_v8 = vadd.f32 3.0, %v283_v16  ;;  %v306_v33 = vmax.f32 %v290_v18, 0.0  ;;  %v266_v50 = vmul.f32 %v1212_v62, %v1174_v2 }
 0x11a   :  { %v307_v9 = vmax.f32 %v291_v6, 0.0  ;;  %v265_v26 = vmul.f32 %v1212_v62, %v1155_v49  ;;  %v276_v29 = vadd.f32 %v1214_v0, %v257_v37  ;;  %v277_v30 = vadd.f32 %v1214_v0, %v258_v25 }
 0x11b   :  { %v314_v10 = vmax.f32 %v298_v21, 0.0  ;;  %v315_v11 = vmax.f32 %v299_v8, 0.0  ;;  %v322_v12 = vmin.f32 %v306_v33, 6.0  ;;  %v285_v31 = vadd.f32 %v1214_v0, %v266_v50 }
 0x11c   :  { %v323_v22 = vmin.f32 %v307_v9, 6.0  ;;  %v284_v20 = vadd.f32 %v1214_v0, %v265_v26  ;;  %v292_v23 = vadd.f32 3.0, %v276_v29  ;;  %v293_v35 = vadd.f32 3.0, %v277_v30 }
 0x11d   :  { %v330_v13 = vmin.f32 %v314_v10, 6.0  ;;  %v331_v24 = vmin.f32 %v315_v11, 6.0  ;;  %v338_v27 = vmul.f32 %v322_v12, %v274_v61  ;;  %v301_v36 = vadd.f32 3.0, %v285_v31 }
 0x11e   :  { %v339_v28 = vmul.f32 %v323_v22, %v275_v63  ;;  %v300_v15 = vadd.f32 3.0, %v284_v20  ;;  %v308_v49 = vmax.f32 %v292_v23, 0.0  ;;  %v309_v62 = vmax.f32 %v293_v35, 0.0 }
 0x11f   :  { %v346_v32 = vmul.f32 %v330_v13, %v282_v4  ;;  %v347_v14 = vmul.f32 %v331_v24, %v283_v16  ;;  %v317_v39 = vmax.f32 %v301_v36, 0.0 }
 0x120   :  { %v352_v34 = vpack.c.bf16 %v339_v28, %v338_v27  ;;  %v316_v38 = vmax.f32 %v300_v15, 0.0  ;;  %v324_v40 = vmin.f32 %v308_v49, 6.0  ;;  %v325_v41 = vmin.f32 %v309_v62, 6.0 }
 0x121   :  { %v356_v2 = vpack.c.bf16 %v347_v14, %v346_v32  ;;  %v333_v17 = vmin.f32 %v317_v39, 6.0 }
 0x122   :  { %v332_v42 = vmin.f32 %v316_v38, 6.0  ;;  %v340_v43 = vmul.f32 %v324_v40, %v276_v29  ;;  %v341_v44 = vmul.f32 %v325_v41, %v277_v30 }
 0x123   :  { %v349_v0 = vmul.f32 %v333_v17, %v285_v31 }
 0x124   :  { %v348_v19 = vmul.f32 %v332_v42, %v284_v20  ;;  %v353_v45 = vpack.c.bf16 %v341_v44, %v340_v43 }
 0x126   :  { %v357_v46 = vpack.c.bf16 %v349_v0, %v348_v19 }
 0x128   :  { %435 = vmatmul.bf16.gmra.mxu1 %v351_v5  ;;  %455 = vmatmul.bf16.gmra.mxu2 %v355_v7 }
 0x138   :  { %440 = vmatmul.bf16.gmra.mxu1 %v352_v34  ;;  %460 = vmatmul.bf16.gmra.mxu2 %v356_v2 }
 0x148   :  { %445 = vmatmul.bf16.gmra.mxu1 %v353_v45  ;;  %465 = vmatmul.bf16.gmra.mxu2 %v357_v46 }
 0x195   :  { %v1264_v47 = vpop.f32.mrf.mxu1 }
 0x196   :  { %v492_v61 = vmul.f32 %v1264_v47, %v1264_v47 }
 0x19b   :  { %v1266_v48 = vpop.f32.mrf.mxu2 }
 0x19c   :  { %v500_v26 = vmul.f32 %v1266_v48, %v1266_v48 }
 0x19d   :  { %v1268_v51 = vpop.f32.mrf.mxu1 }
 0x19e   :  { %v493_v60 = vmul.f32 %v1268_v51, %v1268_v51  ;;  %v471_v63 = vadd.f32 %v1268_v51, %v1264_v47 }
 0x1a0   :  { %v508_v3 = vadd.f32 %v493_v60, %v492_v61 }
 0x1a3   :  { %v1270_v52 = vpop.f32.mrf.mxu2 }
 0x1a4   :  { %v501_v30 = vmul.f32 %v1270_v52, %v1270_v52 }
 0x1a5   :  { %v1272_v53 = vpop.f32.mrf.mxu1 }
 0x1a6   :  { %v494_v1 = vmul.f32 %v1272_v53, %v1272_v53  ;;  %v472_v4 = vadd.f32 %v471_v63, %v1272_v53 }
 0x1a8   :  { %v509_v18 = vadd.f32 %v508_v3, %v494_v1 }
 0x1ab   :  { %v1274_v54 = vpop.f32.mrf.mxu2 }
 0x1ac   :  { %v502_v14 = vmul.f32 %v1274_v54, %v1274_v54 }
 0x1ad   :  { %v1276_v55 = vpop.f32.mrf.mxu1 }
 0x1ae   :  { %v495_v16 = vmul.f32 %v1276_v55, %v1276_v55  ;;  %v473_v6 = vadd.f32 %v472_v4, %v1276_v55 }
 0x1b0   :  { %v510_v8 = vadd.f32 %v509_v18, %v495_v16 }
 0x1b3   :  { %v1278_v56 = vpop.f32.mrf.mxu2 }
 0x1b4   :  { %v503_v23 = vmul.f32 %v1278_v56, %v1278_v56 }
 0x1b5   :  { %v1280_v57 = vpop.f32.mrf.mxu1 }
 0x1b6   :  { %v496_v7 = vmul.f32 %v1280_v57, %v1280_v57  ;;  %v474_v33 = vadd.f32 %v473_v6, %v1280_v57 }
 0x1b8   :  { %v511_v10 = vadd.f32 %v510_v8, %v496_v7 }
 0x1bb   :  { %v1282_v58 = vpop.f32.mrf.mxu2 }
 0x1bc   :  { %v504_v2 = vmul.f32 %v1282_v58, %v1282_v58 }
 0x1bd   :  { %v1284_v59 = vpop.f32.mrf.mxu1 }
 0x1be   :  { %v497_v9 = vmul.f32 %v1284_v59, %v1284_v59  ;;  %v475_v11 = vadd.f32 %v474_v33, %v1284_v59 }
 0x1c0   :  { %v512_v22 = vadd.f32 %v511_v10, %v497_v9 }
 0x1c3   :  { %v1302_v21 = vpop.f32.mrf.mxu2 }
 0x1c4   :  { %v505_v62 = vmul.f32 %v1302_v21, %v1302_v21 }
 0x1c5   :  { %v1297_v5 = vpop.f32.mrf.mxu1 }
 0x1c6   :  { %v498_v12 = vmul.f32 %v1297_v5, %v1297_v5  ;;  %v476_v13 = vadd.f32 %v475_v11, %v1297_v5 }
 0x1c8   :  { %v513_v37 = vadd.f32 %v512_v22, %v498_v12 }
 0x1cb   :  { %v1319_v29 = vpop.f32.mrf.mxu2 }
 0x1cc   :  { %v506_v41 = vmul.f32 %v1319_v29, %v1319_v29 }
 0x1cd   :  { %v1311_v24 = vpop.f32.mrf.mxu1 }
 0x1ce   :  { %v477_v25 = vadd.f32 %v476_v13, %v1311_v24  ;;  %v499_v50 = vmul.f32 %v1311_v24, %v1311_v24 }
 0x1d0   :  { %v478_v27 = vadd.f32 %v477_v25, %v1266_v48  ;;  %v514_v28 = vadd.f32 %v513_v37, %v499_v50 }
 0x1d2   :  { %v479_v31 = vadd.f32 %v478_v27, %v1270_v52  ;;  %v515_v32 = vadd.f32 %v514_v28, %v500_v26  ;;  %v534_v26 = vld [vmem:[%s1560_s5] sm:$0x1]  ;;  %s1029_s5 = smov [#allocation2]  }
 0x1d3   :  { %v1336_v40 = vpop.f32.mrf.mxu2 }
 0x1d4   :  { %v480_v20 = vadd.f32 %v479_v31, %v1274_v54  ;;  %v516_v34 = vadd.f32 %v515_v32, %v501_v30  ;;  %v507_v44 = vmul.f32 %v1336_v40, %v1336_v40  ;;  %v547_v31 = vld [vmem:[%s1561_s6] sm:$0x1]  ;;  %s848_s6 = sshll.u32 %s1029_s5, 4  ;;  %s849_s6 = int_to_ptr.vmem [resolvable:$true] %s848_s6 }
 0x1d6   :  { %v517_v35 = vadd.f32 %v516_v34, %v502_v14  ;;  %v481_v36 = vadd.f32 %v480_v20, %v1278_v56 }
 0x1d8   :  { %v482_v15 = vadd.f32 %v481_v36, %v1282_v58  ;;  %v518_v49 = vadd.f32 %v517_v35, %v503_v23 }
 0x1da   :  { %v483_v38 = vadd.f32 %v482_v15, %v1302_v21  ;;  %v519_v39 = vadd.f32 %v518_v49, %v504_v2 }
 0x1dc   :  { %v484_v42 = vadd.f32 %v483_v38, %v1319_v29  ;;  %v520_v17 = vadd.f32 %v519_v39, %v505_v62 }
 0x1de   :  { %v485_v43 = vadd.f32 %v484_v42, %v1336_v40  ;;  %v521_v19 = vadd.f32 %v520_v17, %v506_v41 }
 0x1e0   :  { %v486_v0 = vrot.slane %v485_v43, 4  ;;  %v522_v45 = vadd.f32 %v521_v19, %v507_v44 }
 0x1e2   :  { %v487_v46 = vadd.f32 %v486_v0, %v485_v43  ;;  %v523_v60 = vrot.slane %v522_v45, 4 }
 0x1e4   :  { %v488_v61 = vrot.slane %v487_v46, 2  ;;  %v524_v63 = vadd.f32 %v523_v60, %v522_v45 }
 0x1e6   :  { %v489_v1 = vadd.f32 %v488_v61, %v487_v46  ;;  %v525_v3 = vrot.slane %v524_v63, 2 }
 0x1e8   :  { %v490_v4 = vrot.slane %v489_v1, 1  ;;  %v526_v16 = vadd.f32 %v525_v3, %v524_v63 }
 0x1ea   :  { %v491_v18 = vadd.f32 %v490_v4, %v489_v1  ;;  %v527_v6 = vrot.slane %v526_v16, 1 }
 0x1ec   :  { %v528_v7 = vadd.f32 %v527_v6, %v526_v16  ;;  %v529_v8 = vmul.f32 0.0078125, %v491_v18 }
 0x1ee   :  { %v530_v33 = vmul.f32 0.0078125, %v528_v7  ;;  %v531_v9 = vmul.f32 %v529_v8, %v529_v8 }
 0x1f0   :  { %v532_v10 = vsub.f32 %v530_v33, %v531_v9 }
 0x1f2   :  { %v533_v11 = vmax.f32 %v532_v10, 0.0 }
 0x1f4   :  { %v535_v12 = vadd.f32 1e-05, %v533_v11 }
 0x1f6   :  { %969 = vrsqrt.f32 %v535_v12  ;;  %vm542_vm6 = vweird.f32 %v535_v12 }
 0x1fc   :  { %v970_v22 = vpop.eup %969 }
 0x1fd   :  { %v537_v13 = vmul.f32 %v970_v22, %v535_v12  ;;  %vm543_vm5 = vweird.f32 %v970_v22 }
 0x1fe   :  { %vm544_vm7 = vmor %vm542_vm6, %vm543_vm5 }
 0x1ff   :  { %v538_v37 = vmul.f32 %v970_v22, %v537_v13 }
 0x201   :  { %v539_v25 = vmul.f32 0.5, %v538_v37 }
 0x203   :  { %v540_v50 = vsub.f32 1.5, %v539_v25 }
 0x205   :  { %v541_v27 = vmul.f32 %v970_v22, %v540_v50 }
 0x207   :  { %v545_v28 = vsel %vm544_vm7, %v970_v22, %v541_v27 }
 0x208   :  { %v546_v30 = vmul.f32 %v545_v28, %v534_v26 }
 0x20a   :  { %v548_v32 = vmul.f32 %v546_v30, %v529_v8  ;;  %v551_v14 = vperm.slane %v546_v30, 0 }
 0x20c   :  { %v549_v20 = vsub.f32 %v547_v31, %v548_v32  ;;  %v557_v23 = vmul.f32 %v551_v14, %v1280_v57  ;;  %v555_v35 = vmul.f32 %v551_v14, %v1272_v53  ;;  %v553_v36 = vmul.f32 %v551_v14, %v1264_v47 }
 0x20d   :  { %v558_v53 = vmul.f32 %v551_v14, %v1284_v59  ;;  %v556_v47 = vmul.f32 %v551_v14, %v1276_v55  ;;  %v554_v57 = vmul.f32 %v551_v14, %v1268_v51  ;;  %v561_v55 = vmul.f32 %v551_v14, %v1266_v48 }
 0x20e   :  { %v570_v34 = vperm.slane %v549_v20, 0  ;;  %v560_v51 = vmul.f32 %v551_v14, %v1311_v24  ;;  %v559_v19 = vmul.f32 %v551_v14, %v1297_v5  ;;  %v564_v24 = vmul.f32 %v551_v14, %v1278_v56 }
 0x20f   :  { %v563_v5 = vmul.f32 %v551_v14, %v1274_v54  ;;  %v562_v63 = vmul.f32 %v551_v14, %v1270_v52  ;;  %v567_v54 = vmul.f32 %v551_v14, %v1319_v29  ;;  %v566_v52 = vmul.f32 %v551_v14, %v1302_v21 }
 0x210   :  { %v1353_v2 = vadd.f32 %v570_v34, %v557_v23  ;;  %v1355_v15 = vadd.f32 %v570_v34, %v555_v35  ;;  %v1357_v49 = vadd.f32 %v570_v34, %v553_v36  ;;  %v1368_v41 = vadd.f32 %v570_v34, %v558_v53 }
 0x211   :  { %v1370_v42 = vadd.f32 %v570_v34, %v556_v47  ;;  %v1372_v17 = vadd.f32 %v570_v34, %v554_v57  ;;  %v1383_v0 = vadd.f32 %v570_v34, %v561_v55  ;;  %v1385_v45 = vadd.f32 %v570_v34, %v560_v51 }
 0x212   :  { %v592_v62 = vmul.f32 %v1353_v2, %v1353_v2  ;;  %v590_v38 = vmul.f32 %v1355_v15, %v1355_v15  ;;  %v588_v39 = vmul.f32 %v1357_v49, %v1357_v49  ;;  %v593_v43 = vmul.f32 %v1368_v41, %v1368_v41 }
 0x213   :  { %v591_v44 = vmul.f32 %v1370_v42, %v1370_v42  ;;  %v589_v59 = vmul.f32 %v1372_v17, %v1372_v17  ;;  %v1387_v46 = vadd.f32 %v570_v34, %v559_v19  ;;  %v596_v60 = vmul.f32 %v1383_v0, %v1383_v0 }
 0x214   :  { %612 = vadd.xlane.f32.xlu2 %v592_v62  ;;  %608 = vadd.xlane.f32.xlu1 %v590_v38  ;;  %v595_v61 = vmul.f32 %v1385_v45, %v1385_v45  ;;  %v1398_v1 = vadd.f32 %v570_v34, %v564_v24  ;;  %v1400_v3 = vadd.f32 %v570_v34, %v563_v5 }
 0x215   :  { %604 = vadd.xlane.f32.xlu0 %v588_v39  ;;  %v594_v48 = vmul.f32 %v1387_v46, %v1387_v46  ;;  %v1402_v4 = vadd.f32 %v570_v34, %v562_v63  ;;  %v565_v6 = vmul.f32 %v551_v14, %v1282_v58  ;;  %v1413_v7 = vadd.f32 %v570_v34, %v567_v54 }
 0x216   :  { %v599_v16 = vmul.f32 %v1398_v1, %v1398_v1  ;;  %v598_v18 = vmul.f32 %v1400_v3, %v1400_v3  ;;  %v1415_v8 = vadd.f32 %v570_v34, %v566_v52  ;;  %v568_v21 = vmul.f32 %v551_v14, %v1336_v40 }
 0x217   :  { %v597_v56 = vmul.f32 %v1402_v4, %v1402_v4  ;;  %v1417_v33 = vadd.f32 %v570_v34, %v565_v6  ;;  %v602_v9 = vmul.f32 %v1413_v7, %v1413_v7 }
 0x218   :  { %v601_v10 = vmul.f32 %v1415_v8, %v1415_v8  ;;  %v1426_v58 = vadd.f32 %v570_v34, %v568_v21 }
 0x219   :  { %v600_v29 = vmul.f32 %v1417_v33, %v1417_v33 }
 0x21a   :  { %v603_v11 = vmul.f32 %v1426_v58, %v1426_v58 }
 0x21c   :  { %614 = vadd.xlane.f32.xlu2 %v593_v43  ;;  %610 = vadd.xlane.f32.xlu1 %v591_v44 }
 0x21d   :  { %606 = vadd.xlane.f32.xlu0 %v589_v59 }
 0x224   :  { %620 = vadd.xlane.f32.xlu2 %v596_v60  ;;  %618 = vadd.xlane.f32.xlu1 %v595_v61 }
 0x225   :  { %616 = vadd.xlane.f32.xlu0 %v594_v48 }
 0x22c   :  { %626 = vadd.xlane.f32.xlu2 %v599_v16  ;;  %624 = vadd.xlane.f32.xlu1 %v598_v18 }
 0x22d   :  { %622 = vadd.xlane.f32.xlu0 %v597_v56 }
 0x234   :  { %632 = vadd.xlane.f32.xlu2 %v602_v9  ;;  %630 = vadd.xlane.f32.xlu1 %v601_v10 }
 0x235   :  { %628 = vadd.xlane.f32.xlu0 %v600_v29 }
 0x23d   :  { %634 = vadd.xlane.f32.xlu0 %v603_v11 }
 0x287   :  { %v613_v12 = vpop.xlane.xlu2 %612  ;;  %v609_v22 = vpop.xlane.xlu1 %608 }
 0x288   :  { %v640_v13 = vmax.f32 %v613_v12, 1e-24  ;;  %v638_v37 = vmax.f32 %v609_v22, 1e-24  ;;  %v605_v25 = vpop.xlane.xlu0 %604 }
 0x289   :  { %v636_v50 = vmax.f32 %v605_v25, 1e-24 }
 0x28a   :  { %971 = vrsqrt.f32 %v640_v13  ;;  %vm698_vm8 = vweird.f32 %v640_v13  ;;  %vm678_vm10 = vweird.f32 %v638_v37 }
 0x28b   :  { %973 = vrsqrt.f32 %v638_v37  ;;  %vm658_vm12 = vweird.f32 %v636_v50 }
 0x28c   :  { %975 = vrsqrt.f32 %v636_v50 }
 0x28f   :  { %v615_v26 = vpop.xlane.xlu2 %614  ;;  %v611_v27 = vpop.xlane.xlu1 %610 }
 0x290   :  { %v972_v28 = vpop.eup %971  ;;  %v1430_v40 = vmax.f32 %v615_v26, 1e-24  ;;  %v1432_v30 = vmax.f32 %v611_v27, 1e-24  ;;  %v607_v31 = vpop.xlane.xlu0 %606 }
 0x291   :  { %v974_v32 = vpop.eup %973  ;;  %v693_v14 = vmul.f32 %v972_v28, %v640_v13  ;;  %v1434_v20 = vmax.f32 %v607_v31, 1e-24  ;;  %vm699_vm9 = vweird.f32 %v972_v28 }
 0x292   :  { %v976_v34 = vpop.eup %975  ;;  %v673_v23 = vmul.f32 %v974_v32, %v638_v37  ;;  %977 = vrsqrt.f32 %v1430_v40  ;;  %vm679_vm11 = vweird.f32 %v974_v32  ;;  %vm700_vm14 = vmor %vm698_vm8, %vm699_vm9  ;;  %vm708_vm1 = vweird.f32 %v1430_v40 }
 0x293   :  { %v694_v35 = vmul.f32 %v972_v28, %v693_v14  ;;  %v653_v36 = vmul.f32 %v976_v34, %v636_v50  ;;  %979 = vrsqrt.f32 %v1432_v30  ;;  %vm659_vm13 = vweird.f32 %v976_v34  ;;  %vm680_vm15 = vmor %vm678_vm10, %vm679_vm11 }
 0x294   :  { %v674_v62 = vmul.f32 %v974_v32, %v673_v23  ;;  %981 = vrsqrt.f32 %v1434_v20  ;;  %vm660_vm0 = vmor %vm658_vm12, %vm659_vm13  ;;  %vm688_vm6 = vweird.f32 %v1432_v30  ;;  %vm668_vm7 = vweird.f32 %v1434_v20 }
 0x295   :  { %v695_v38 = vmul.f32 0.5, %v694_v35  ;;  %v654_v39 = vmul.f32 %v976_v34, %v653_v36 }
 0x296   :  { %v675_v53 = vmul.f32 0.5, %v674_v62 }
 0x297   :  { %v696_v47 = vsub.f32 1.5, %v695_v38  ;;  %v655_v57 = vmul.f32 0.5, %v654_v39  ;;  %v621_v43 = vpop.xlane.xlu2 %620  ;;  %v619_v44 = vpop.xlane.xlu1 %618 }
 0x298   :  { %v1439_v59 = vpop.eup %977  ;;  %v676_v55 = vsub.f32 1.5, %v675_v53  ;;  %v1441_v51 = vmax.f32 %v621_v43, 1e-24  ;;  %v617_v19 = vpop.xlane.xlu0 %616  ;;  %v1454_v18 = vmax.f32 %v619_v44, 1e-24 }
 0x299   :  { %v1443_v60 = vpop.eup %979  ;;  %v697_v61 = vmul.f32 %v972_v28, %v696_v47  ;;  %v656_v48 = vsub.f32 1.5, %v655_v57  ;;  %v703_v24 = vmul.f32 %v1439_v59, %v1430_v40  ;;  %vm709_vm2 = vweird.f32 %v1439_v59 }
 0x29a   :  { %v1447_v5 = vpop.eup %981  ;;  %v677_v63 = vmul.f32 %v974_v32, %v676_v55  ;;  %v683_v16 = vmul.f32 %v1443_v60, %v1432_v30  ;;  %983 = vrsqrt.f32 %v1441_v51  ;;  %v1471_v50 = vmax.f32 %v617_v19, 1e-24  ;;  %vm710_vm5 = vmor %vm708_vm1, %vm709_vm2 }
 0x29b   :  { %v701_v56 = vsel %vm700_vm14, %v972_v28, %v697_v61  ;;  %v657_v54 = vmul.f32 %v976_v34, %v656_v48  ;;  %v704_v52 = vmul.f32 %v1439_v59, %v703_v24  ;;  %v663_v6 = vmul.f32 %v1447_v5, %v1434_v20 }
 0x29c   :  { %v816_v9 = vmul.f32 %v701_v56, %v1353_v2  ;;  %v681_v10 = vsel %vm680_vm15, %v974_v32, %v677_v63  ;;  %v684_v29 = vmul.f32 %v1443_v60, %v683_v16  ;;  %985 = vrsqrt.f32 %v1454_v18 }
 0x29d   :  { %v814_v21 = vmul.f32 %v681_v10, %v1355_v15  ;;  %v661_v11 = vsel %vm660_vm0, %v976_v34, %v657_v54  ;;  %v705_v12 = vmul.f32 0.5, %v704_v52  ;;  %v664_v22 = vmul.f32 %v1447_v5, %v663_v6 }
 0x29e   :  { %832 = vst [vmem:[#allocation2 + $0x20] sm:$0xff] %v816_v9  ;;  %v812_v13 = vmul.f32 %v661_v11, %v1357_v49  ;;  %v685_v37 = vmul.f32 0.5, %v684_v29  ;;  %vm689_vm3 = vweird.f32 %v1443_v60  ;;  %vm669_vm4 = vweird.f32 %v1447_v5 }
 0x29f   :  { %830 = vst [vmem:[#allocation2 + $0x10] sm:$0xff] %v814_v21  ;;  %v706_v2 = vsub.f32 1.5, %v705_v12  ;;  %v665_v25 = vmul.f32 0.5, %v664_v22  ;;  %v627_v15 = vpop.xlane.xlu2 %626  ;;  %v625_v26 = vpop.xlane.xlu1 %624  ;;  %987 = vrsqrt.f32 %v1471_v50  ;;  %vm690_vm8 = vmor %vm688_vm6, %vm689_vm3  ;;  %vm738_vm11 = vweird.f32 %v1441_v51 }
 0x2a0   :  { %v984_v27 = vpop.eup %983  ;;  %828 = vst [vmem:[#allocation2] sm:$0xff] %v812_v13  ;;  %v686_v28 = vsub.f32 1.5, %v685_v37  ;;  %v1474_v49 = vmax.f32 %v627_v15, 1e-24  ;;  %v1476_v31 = vmax.f32 %v625_v26, 1e-24  ;;  %v623_v32 = vpop.xlane.xlu0 %622  ;;  %vm670_vm9 = vmor %vm668_vm7, %vm669_vm4  ;;  %vm728_vm14 = vweird.f32 %v1454_v18 }
 0x2a1   :  { %v707_v14 = vmul.f32 %v1439_v59, %v706_v2  ;;  %v666_v34 = vsub.f32 1.5, %v665_v25  ;;  %v733_v23 = vmul.f32 %v984_v27, %v1441_v51  ;;  %v1501_v44 = vmax.f32 %v623_v32, 1e-24 }
 0x2a2   :  { %v687_v35 = vmul.f32 %v1443_v60, %v686_v28  ;;  %989 = vrsqrt.f32 %v1474_v49  ;;  %v986_v39 = vpop.eup %985  ;;  %vm739_vm10 = vweird.f32 %v984_v27  ;;  %vm718_vm15 = vweird.f32 %v1471_v50 }
 0x2a3   :  { %v711_v36 = vsel %vm710_vm5, %v1439_v59, %v707_v14  ;;  %v667_v62 = vmul.f32 %v1447_v5, %v666_v34  ;;  %v734_v38 = vmul.f32 %v984_v27, %v733_v23  ;;  %991 = vrsqrt.f32 %v1476_v31  ;;  %vm740_vm12 = vmor %vm738_vm11, %vm739_vm10 }
 0x2a4   :  { %v817_v40 = vmul.f32 %v711_v36, %v1368_v41  ;;  %v691_v53 = vsel %vm690_vm8, %v1443_v60, %v687_v35  ;;  %v723_v57 = vmul.f32 %v986_v39, %v1454_v18  ;;  %993 = vrsqrt.f32 %v1501_v44 }
 0x2a5   :  { %v815_v30 = vmul.f32 %v691_v53, %v1370_v42  ;;  %v671_v20 = vsel %vm670_vm9, %v1447_v5, %v667_v62  ;;  %v735_v47 = vmul.f32 0.5, %v734_v38  ;;  %v988_v60 = vpop.eup %987  ;;  %vm729_vm13 = vweird.f32 %v986_v39 }
 0x2a6   :  { %833 = vst [vmem:[#allocation2 + $0x28] sm:$0xff] %v817_v40  ;;  %v813_v43 = vmul.f32 %v671_v20, %v1372_v17  ;;  %v724_v59 = vmul.f32 %v986_v39, %v723_v57  ;;  %v713_v63 = vmul.f32 %v988_v60, %v1471_v50  ;;  %vm730_vm0 = vmor %vm728_vm14, %vm729_vm13  ;;  %vm719_vm1 = vweird.f32 %v988_v60 }
 0x2a7   :  { %831 = vst [vmem:[#allocation2 + $0x18] sm:$0xff] %v815_v30  ;;  %v736_v41 = vsub.f32 1.5, %v735_v47  ;;  %v633_v55 = vpop.xlane.xlu2 %632  ;;  %v631_v19 = vpop.xlane.xlu1 %630  ;;  %vm720_vm4 = vmor %vm718_vm15, %vm719_vm1  ;;  %vm768_vm5 = vweird.f32 %v1474_v49  ;;  %vm758_vm6 = vweird.f32 %v1476_v31  ;;  %vm748_vm10 = vweird.f32 %v1501_v44 }
 0x2a8   :  { %829 = vst [vmem:[#allocation2 + $0x8] sm:$0xff] %v813_v43  ;;  %v1504_v42 = vmax.f32 %v633_v55, 1e-24  ;;  %v1506_v61 = vmax.f32 %v631_v19, 1e-24  ;;  %v629_v48 = vpop.xlane.xlu0 %628  ;;  %v990_v24 = vpop.eup %989  ;;  %v725_v17 = vmul.f32 0.5, %v724_v59  ;;  %v714_v6 = vmul.f32 %v988_v60, %v713_v63 }
 0x2a9   :  { %v737_v5 = vmul.f32 %v984_v27, %v736_v41  ;;  %v992_v16 = vpop.eup %991  ;;  %v763_v56 = vmul.f32 %v990_v24, %v1474_v49  ;;  %vm769_vm2 = vweird.f32 %v990_v24  ;;  %v1519_v13 = vmax.f32 %v629_v48, 1e-24 }
 0x2aa   :  { %995 = vrsqrt.f32 %v1504_v42  ;;  %v726_v52 = vsub.f32 1.5, %v725_v17  ;;  %v753_v9 = vmul.f32 %v992_v16, %v1476_v31  ;;  %v715_v21 = vmul.f32 0.5, %v714_v6  ;;  %v994_v12 = vpop.eup %993  ;;  %vm770_vm7 = vmor %vm768_vm5, %vm769_vm2 }
 0x2ab   :  { %v741_v54 = vsel %vm740_vm12, %v984_v27, %v737_v5  ;;  %v764_v51 = vmul.f32 %v990_v24, %v763_v56  ;;  %997 = vrsqrt.f32 %v1506_v61  ;;  %v743_v2 = vmul.f32 %v994_v12, %v1501_v44 }
 0x2ac   :  { %v820_v10 = vmul.f32 %v741_v54, %v1383_v0  ;;  %v727_v29 = vmul.f32 %v986_v39, %v726_v52  ;;  %v754_v11 = vmul.f32 %v992_v16, %v753_v9  ;;  %v716_v37 = vsub.f32 1.5, %v715_v21 }
 0x2ad   :  { %v765_v22 = vmul.f32 0.5, %v764_v51  ;;  %vm759_vm3 = vweird.f32 %v992_v16  ;;  %999 = vrsqrt.f32 %v1519_v13  ;;  %v744_v14 = vmul.f32 %v994_v12, %v743_v2 }
 0x2ae   :  { %836 = vst [vmem:[#allocation2 + $0x40] sm:$0xff] %v820_v10  ;;  %v731_v0 = vsel %vm730_vm0, %v986_v39, %v727_v29  ;;  %v755_v18 = vmul.f32 0.5, %v754_v11  ;;  %v717_v28 = vmul.f32 %v988_v60, %v716_v37  ;;  %vm760_vm8 = vmor %vm758_vm6, %vm759_vm3  ;;  %vm749_vm9 = vweird.f32 %v994_v12 }
 0x2af   :  { %v819_v15 = vmul.f32 %v731_v0, %v1385_v45  ;;  %v766_v26 = vsub.f32 1.5, %v765_v22  ;;  %v745_v38 = vmul.f32 0.5, %v744_v14  ;;  %vm750_vm12 = vmor %vm748_vm10, %vm749_vm9  ;;  %vm798_vm13 = vweird.f32 %v1504_v42 }
 0x2b0   :  { %v996_v25 = vpop.eup %995  ;;  %v635_v27 = vpop.xlane.xlu0 %634  ;;  %v756_v32 = vsub.f32 1.5, %v755_v18  ;;  %v721_v36 = vsel %vm720_vm4, %v988_v60, %v717_v28  ;;  %vm788_vm0 = vweird.f32 %v1506_v61  ;;  %vm778_vm3 = vweird.f32 %v1519_v13 }
 0x2b1   :  { %v793_v34 = vmul.f32 %v996_v25, %v1504_v42  ;;  %v998_v23 = vpop.eup %997  ;;  %835 = vst [vmem:[#allocation2 + $0x38] sm:$0xff] %v819_v15  ;;  %v767_v35 = vmul.f32 %v990_v24, %v766_v26  ;;  %v1530_v45 = vmax.f32 %v635_v27, 1e-24  ;;  %v818_v40 = vmul.f32 %v721_v36, %v1387_v46 }
 0x2b2   :  { %v757_v62 = vmul.f32 %v992_v16, %v756_v32  ;;  %v783_v50 = vmul.f32 %v998_v23, %v1506_v61  ;;  %v746_v31 = vsub.f32 1.5, %v745_v38  ;;  %vm799_vm11 = vweird.f32 %v996_v25 }
 0x2b3   :  { %v794_v39 = vmul.f32 %v996_v25, %v793_v34  ;;  %v771_v53 = vsel %vm770_vm7, %v990_v24, %v767_v35  ;;  %v1000_v47 = vpop.eup %999  ;;  %834 = vst [vmem:[#allocation2 + $0x30] sm:$0xff] %v818_v40  ;;  %1001 = vrsqrt.f32 %v1530_v45  ;;  %vm800_vm14 = vmor %vm798_vm13, %vm799_vm11  ;;  %vm789_vm15 = vweird.f32 %v998_v23 }
 0x2b4   :  { %v823_v49 = vmul.f32 %v771_v53, %v1398_v1  ;;  %v761_v30 = vsel %vm760_vm8, %v992_v16, %v757_v62  ;;  %v784_v43 = vmul.f32 %v998_v23, %v783_v50  ;;  %v747_v46 = vmul.f32 %v994_v12, %v746_v31  ;;  %vm790_vm1 = vmor %vm788_vm0, %vm789_vm15 }
 0x2b5   :  { %v795_v20 = vmul.f32 0.5, %v794_v39  ;;  %v822_v57 = vmul.f32 %v761_v30, %v1400_v3  ;;  %v773_v59 = vmul.f32 %v1000_v47, %v1519_v13  ;;  %vm779_vm2 = vweird.f32 %v1000_v47 }
 0x2b6   :  { %839 = vst [vmem:[#allocation2 + $0x58] sm:$0xff] %v823_v49  ;;  %v785_v1 = vmul.f32 0.5, %v784_v43  ;;  %v751_v55 = vsel %vm750_vm12, %v994_v12, %v747_v46  ;;  %vm780_vm4 = vmor %vm778_vm3, %vm779_vm2  ;;  %vm808_vm6 = vweird.f32 %v1530_v45 }
 0x2b7   :  { %v796_v41 = vsub.f32 1.5, %v795_v20  ;;  %838 = vst [vmem:[#allocation2 + $0x50] sm:$0xff] %v822_v57  ;;  %v774_v3 = vmul.f32 %v1000_v47, %v773_v59  ;;  %v821_v44 = vmul.f32 %v751_v55, %v1402_v4 }
 0x2b8   :  { %v786_v60 = vsub.f32 1.5, %v785_v1 }
 0x2b9   :  { %v797_v19 = vmul.f32 %v996_v25, %v796_v41  ;;  %v775_v24 = vmul.f32 0.5, %v774_v3  ;;  %v1002_v5 = vpop.eup %1001  ;;  %837 = vst [vmem:[#allocation2 + $0x48] sm:$0xff] %v821_v44 }
 0x2ba   :  { %v787_v63 = vmul.f32 %v998_v23, %v786_v60  ;;  %v803_v42 = vmul.f32 %v1002_v5, %v1530_v45  ;;  %vm809_vm5 = vweird.f32 %v1002_v5 }
 0x2bb   :  { %v801_v48 = vsel %vm800_vm14, %v996_v25, %v797_v19  ;;  %v776_v16 = vsub.f32 1.5, %v775_v24  ;;  %vm810_vm7 = vmor %vm808_vm6, %vm809_vm5 }
 0x2bc   :  { %v826_v17 = vmul.f32 %v801_v48, %v1413_v7  ;;  %v791_v56 = vsel %vm790_vm1, %v998_v23, %v787_v63  ;;  %v804_v52 = vmul.f32 %v1002_v5, %v803_v42 }
 0x2bd   :  { %v825_v4 = vmul.f32 %v791_v56, %v1415_v8  ;;  %v777_v54 = vmul.f32 %v1000_v47, %v776_v16 }
 0x2be   :  { %842 = vst [vmem:[#allocation2 + $0x70] sm:$0xff] %v826_v17  ;;  %v805_v7 = vmul.f32 0.5, %v804_v52 }
 0x2bf   :  { %841 = vst [vmem:[#allocation2 + $0x68] sm:$0xff] %v825_v4  ;;  %v781_v6 = vsel %vm780_vm4, %v1000_v47, %v777_v54 }
 0x2c0   :  { %v824_v9 = vmul.f32 %v781_v6, %v1417_v33  ;;  %v806_v61 = vsub.f32 1.5, %v805_v7 }
 0x2c2   :  { %840 = vst [vmem:[#allocation2 + $0x60] sm:$0xff] %v824_v9  ;;  %v807_v8 = vmul.f32 %v1002_v5, %v806_v61 }
 0x2c4   :  { %v811_v10 = vsel %vm810_vm7, %v1002_v5, %v807_v8 }
 0x2c5   :  { %v827_v51 = vmul.f32 %v811_v10, %v1426_v58 }
 0x2c7   :  { %843 = vst [vmem:[#allocation2 + $0x78] sm:$0xff] %v827_v51 }
 0x2c8   :  { %856 = dma.vmem_to_hbm [thread:$0]  %s849_s6, 2048, %s851_s18, [#allocation3], %s1030_s19, %s1030_s19, %s1031_s0  }
 0x2c9   :  { %1027 = dma.done.wait [#allocation3], 2048  }
 0x2ca   :  { %1028 = vsyncadd [#allocation3], 4294965248 }
 0x2cb   :  { %861 = vsyncpa [#allocation3], 1 }

</bundles_post_ra>
